<compile_context>
chip_gen: v7x
topology: tpu7x:2x2x1
jax: 0.10.0
libtpu: 0.0.40
codegen_flags: <defaults>
</compile_context>

<pallas_src>
import math
import functools

import numpy as np
import jax
import jax.numpy as jnp
from jax import lax
from jax.experimental import pallas as pl
from jax.experimental.pallas import tpu as pltpu

_NEG_BIG = -1e30


def _mha_flash_kernel(nhead, hdim,
                      mask_ref, q_ref, k_ref, v_ref, wo_ref, bo_ref,
                      out_ref,
                      m_ref, l_ref, acc_ref, stage_ref):
    """One (TQ target rows) x (TK source rows) block of masked multi-head attention.

    grid = (num_q_tiles, num_kv_blocks); kv axis is the reduction axis (last,
    'arbitrary').  m/l/acc scratches carry the online-softmax state in f32.
    """
    kv_i = pl.program_id(1)
    nk = pl.num_programs(1)

    @pl.when(kv_i == 0)
    def _init():
        m_ref[...] = jnp.full(m_ref.shape, -jnp.inf, dtype=m_ref.dtype)
        l_ref[...] = jnp.zeros(l_ref.shape, dtype=l_ref.dtype)
        acc_ref[...] = jnp.zeros(acc_ref.shape, dtype=acc_ref.dtype)

    # ---- mask block: edge multiplicities, computed once, shared by all heads
    cnt = mask_ref[...].astype(jnp.float32)                  # (TQ, TK) counts
    neg = jnp.where(cnt > 0.0, 0.0, _NEG_BIG)                # additive mask (f32)

    # ---- scores for ALL heads in one batched MXU call (bf16 in, f32 out) ----
    # q: (H, TQ, hd) bf16 with 1/sqrt(hd) pre-folded; k: (H, TK, hd) bf16
    s = lax.dot_general(q_ref[...], k_ref[...],
                        (((2,), (2,)), ((0,), (0,))),
                        preferred_element_type=jnp.float32)  # (H, TQ, TK)
    s = s + neg[None, :, :]

    # ---- online softmax (stats in f32) --------------------------------------
    m_prev = m_ref[...]                                      # (H, TQ, 1)
    m_new = jnp.maximum(m_prev, jnp.max(s, axis=-1, keepdims=True))
    rescale = jnp.exp(m_prev - m_new)                        # correction for old state
    p = jnp.exp(s - m_new) * cnt[None, :, :]                 # masked -> exactly 0, dups weighted
    l_ref[...] = rescale * l_ref[...] + jnp.sum(p, axis=-1, keepdims=True)
    pv = lax.dot_general(p.astype(jnp.bfloat16), v_ref[...],
                         (((2,), (1,)), ((0,), (0,))),
                         preferred_element_type=jnp.float32)  # (H, TQ, hd)
    acc_ref[...] = rescale * acc_ref[...] + pv
    m_ref[...] = m_new

    # ---- epilogue: normalize, concat heads via staging, ONE output matmul ----
    @pl.when(kv_i == nk - 1)
    def _finalize():
        l = l_ref[...]
        l_safe = jnp.where(l > 0.0, l, 1.0)        # rows with no incoming edge -> 0
        inv = pl.reciprocal(l_safe, approx=True)   # EUP slot
        inv = inv * (2.0 - l_safe * inv)           # one Newton step -> f32 accurate
        out_heads = acc_ref[...] * inv             # (H, TQ, hd) f32; 0 for edge-less rows
        for h in range(nhead):                     # static loop; lane-offset stores only
            stage_ref[:, h * hdim:(h + 1) * hdim] = out_heads[h]
        proj = jnp.dot(stage_ref[...].astype(jnp.bfloat16), wo_ref[...],
                       preferred_element_type=jnp.float32)   # full-K (TQ,E)@(E,E)
        out_ref[...] = (proj + bo_ref[...]).astype(out_ref.dtype)


def _round_up(x, m):
    return ((x + m - 1) // m) * m


def multi_head_dot_product(feats, edge_index, edge_attr, params, nhead):
    """Pallas wrapper mirroring MultiHeadDotProduct.forward (sum aggr, eval mode)."""
    del edge_attr                                  # mult_attr == 0 -> unused
    bs, embed_dim = feats.shape
    hdim = embed_dim // nhead
    scale = 1.0 / math.sqrt(hdim)

    # ---- dense adjacency with edge multiplicity (duplicate edges counted) ----
    # mask[c, r] = #edges r -> c; int8 keeps the only O(bs^2) HBM stream small.
    # TODO(synk): for a static graph build (and bit-pack) this once outside the
    # per-call path instead of every forward.
    r = edge_index[:, 0]
    c = edge_index[:, 1]
    mask = jnp.zeros((bs, bs), jnp.int8).at[c, r].add(1)

    # ---- Q/K/V projections hoisted out of the attention grid (plain XLA) ----
    # (O(bs*E^2), negligible vs O(bs^2*E) attention; kept f32 here, kernel
    # inputs are cast to bf16 below.)
    f32, bf16 = jnp.float32, jnp.bfloat16
    x = feats.astype(f32)
    wq = jnp.asarray(params["wq"], f32); bq = jnp.asarray(params["bq"], f32)
    wk = jnp.asarray(params["wk"], f32); bk = jnp.asarray(params["bk"], f32)
    wv = jnp.asarray(params["wv"], f32); bv = jnp.asarray(params["bv"], f32)

    q = (x @ wq.T + bq) * scale                    # fold 1/sqrt(hdim) into q once
    k = x @ wk.T + bk
    v = x @ wv.T + bv

    def to_heads(t):                               # (bs, E) -> (H, bs, hd), bf16 MXU feed
        return t.reshape(bs, nhead, hdim).transpose(1, 0, 2).astype(bf16)

    qh, kh, vh = to_heads(q), to_heads(k), to_heads(v)
    wo_t = jnp.asarray(params["wo"], f32).T.astype(bf16)      # (E, E) pre-transposed
    bo = jnp.asarray(params["bo"], f32)[None, :]              # (1, E) f32

    # ---- generation-aware tiling (v5e/v6e: 128 MiB VMEM, v7x: 64 MiB) --------
    try:
        vmem_bytes = pltpu.get_tpu_info().vmem_capacity_bytes
    except Exception:
        vmem_bytes = 64 * 1024 * 1024
    big_vmem = vmem_bytes >= 100 * 1024 * 1024
    tq_cap = 512 if big_vmem else 256
    tk_cap = 512

    tq = tq_cap if bs > tq_cap else _round_up(bs, 8)
    tk = tk_cap if bs > tk_cap else _round_up(bs, 8)
    bs_q = _round_up(bs, tq)
    bs_k = _round_up(bs, tk)

    # zero padding: padded rows/cols carry no edges -> contribute nothing
    qh = jnp.pad(qh, ((0, 0), (0, bs_q - bs), (0, 0)))
    kh = jnp.pad(kh, ((0, 0), (0, bs_k - bs), (0, 0)))
    vh = jnp.pad(vh, ((0, 0), (0, bs_k - bs), (0, 0)))
    mask = jnp.pad(mask, ((0, bs_q - bs), (0, bs_k - bs)))

    grid = (bs_q // tq, bs_k // tk)                # reduction (kv) axis last

    kernel = functools.partial(_mha_flash_kernel, nhead, hdim)
    out = pl.pallas_call(
        kernel,
        out_shape=jax.ShapeDtypeStruct((bs_q, embed_dim), jnp.float32),
        grid=grid,
        in_specs=[
            pl.BlockSpec((tq, tk), lambda i, j: (i, j)),                 # mask block
            pl.BlockSpec((nhead, tq, hdim), lambda i, j: (0, i, 0)),     # q tile
            pl.BlockSpec((nhead, tk, hdim), lambda i, j: (0, j, 0)),     # k block
            pl.BlockSpec((nhead, tk, hdim), lambda i, j: (0, j, 0)),     # v block
            pl.BlockSpec((embed_dim, embed_dim), lambda i, j: (0, 0)),   # Wo^T
            pl.BlockSpec((1, embed_dim), lambda i, j: (0, 0)),           # bo
        ],
        out_specs=pl.BlockSpec((tq, embed_dim), lambda i, j: (i, 0)),
        scratch_shapes=[
            pltpu.VMEM((nhead, tq, 1), jnp.float32),      # running max  m
            pltpu.VMEM((nhead, tq, 1), jnp.float32),      # running sum  l
            pltpu.VMEM((nhead, tq, hdim), jnp.float32),   # running acc (head-major)
            pltpu.VMEM((tq, embed_dim), jnp.float32),     # head-concat staging
        ],
        compiler_params=pltpu.CompilerParams(
            dimension_semantics=("parallel", "arbitrary"),
            vmem_limit_bytes=(96 if big_vmem else 48) * 1024 * 1024,
        ),
    )(mask, qh, kh, vh, wo_t, bo)
    return out[:bs]


# ---------------- pure-JAX reference (mirrors the PyTorch edge-wise path) ----
def reference(feats, edge_index, params, nhead):
    bs, embed_dim = feats.shape
    hdim = embed_dim // nhead

    def lin(x, w, b):
        return x @ w.T + b

    q = lin(feats, params["wq"], params["bq"]).reshape(bs, nhead, hdim).transpose(1, 0, 2)
    k = lin(feats, params["wk"], params["bk"]).reshape(bs, nhead, hdim).transpose(1, 0, 2)
    v = lin(feats, params["wv"], params["bv"]).reshape(bs, nhead, hdim).transpose(1, 0, 2)

    r, c = edge_index[:, 0], edge_index[:, 1]
    scores = jnp.einsum("hed,hed->he", q[:, c], k[:, r]) / math.sqrt(hdim)  # (nhead, e)
    scores_t = scores.T                                                     # (e, nhead)

    smax = jax.ops.segment_max(scores_t, c, num_segments=bs)
    ex = jnp.exp(scores_t - smax[c])
    denom = jax.ops.segment_sum(ex, c, num_segments=bs)
    alpha = ex / jnp.where(denom > 0, denom, 1.0)[c]                        # (e, nhead)

    v_edges = v[:, r].transpose(1, 0, 2)                                    # (e, nhead, hdim)
    weighted = alpha[..., None] * v_edges
    agg = jax.ops.segment_sum(weighted, c, num_segments=bs)                 # (bs, nhead, hdim)
    concat = agg.reshape(bs, embed_dim)
    return lin(concat, params["wo"], params["bo"])


def xavier_uniform(key, shape):
    fan_out, fan_in = shape
    a = math.sqrt(6.0 / (fan_in + fan_out))
    return jax.random.uniform(key, shape, jnp.float32, -a, a)


if __name__ == "__main__":
    bs, embed_dim, nhead = 8, 32, 4

    key = jax.random.PRNGKey(0)
    kf, kq, kk, kv, ko = jax.random.split(key, 5)

    feats = jax.random.normal(kf, (bs, embed_dim), jnp.float32)

    # Deterministic params (xavier_uniform weights, zero biases), matching
    # MultiHeadDotProduct.reset_parameters.
    params = {
        "wq": xavier_uniform(kq, (embed_dim, embed_dim)),
        "bq": jnp.zeros((embed_dim,), jnp.float32),
        "wk": xavier_uniform(kk, (embed_dim, embed_dim)),
        "bk": jnp.zeros((embed_dim,), jnp.float32),
        "wv": xavier_uniform(kv, (embed_dim, embed_dim)),
        "bv": jnp.zeros((embed_dim,), jnp.float32),
        "wo": xavier_uniform(ko, (embed_dim, embed_dim)),
        "bo": jnp.zeros((embed_dim,), jnp.float32),
    }

    # Graph: node i receives edges from i, (i+1)%bs, (i+3)%bs, except the last
    # node which keeps NO incoming edge (exercises the no-edge path); one edge
    # (2 -> 5) is duplicated twice (exercises multiplicity handling).
    src = np.concatenate([(np.arange(bs) + d) % bs for d in (0, 1, 3)])
    dst = np.concatenate([np.arange(bs) for _ in range(3)])
    keep = dst != (bs - 1)
    src, dst = src[keep], dst[keep]
    src = np.concatenate([src, np.array([2, 2])])
    dst = np.concatenate([dst, np.array([5, 5])])
    edge_index = jnp.asarray(np.stack([src, dst], axis=1), jnp.int32)      # (e, 2) = (r, c)
    edge_attr = jnp.ones((edge_index.shape[0],), jnp.float32)              # unused (mult_attr=0)

    out = multi_head_dot_product(feats, edge_index, edge_attr, params, nhead)
    out = jax.block_until_ready(out)

    ref = reference(feats, edge_index, params, nhead)
    assert out.shape == (bs, embed_dim)
    err = float(np.max(np.abs(np.asarray(out) - np.asarray(ref))))
    # bf16 MXU feeds with f32 accumulation -> loosened tolerance vs pure f32
    assert np.allclose(np.asarray(out), np.asarray(ref), rtol=5e-2, atol=5e-2), (
        f"mismatch vs reference (max abs err {err})")

    print("KERNEL_OK")
</pallas_src>

<mosaic_0001>
module attributes {stable_mosaic.version = 11 : i64} {
  func.func @_mha_flash_kernel(%arg0: i32, %arg1: i32, %arg2: memref<8x8xi8, #tpu.memory_space<vmem>>, %arg3: memref<4x8x8xbf16, #tpu.memory_space<vmem>>, %arg4: memref<4x8x8xbf16, #tpu.memory_space<vmem>>, %arg5: memref<4x8x8xbf16, #tpu.memory_space<vmem>>, %arg6: memref<32x32xbf16, #tpu.memory_space<vmem>>, %arg7: memref<1x32xf32, #tpu.memory_space<vmem>>, %arg8: memref<8x32xf32, #tpu.memory_space<vmem>>, %arg9: memref<4x8x1xf32, #tpu.memory_space<vmem>>, %arg10: memref<4x8x1xf32, #tpu.memory_space<vmem>>, %arg11: memref<4x8x8xf32, #tpu.memory_space<vmem>>, %arg12: memref<8x32xf32, #tpu.memory_space<vmem>>) attributes {dimension_semantics = [#tpu.dimension_semantics<parallel>, #tpu.dimension_semantics<arbitrary>], iteration_bounds = array<i64: 1, 1>, scalar_prefetch = 0 : i64, scratch_operands = 4 : i64, tpu.core_type = #tpu.core_type<tc>, window_params = [{transform_indices = @transform_0, window_bounds = array<i64: 8, 8>}, {transform_indices = @transform_1, window_bounds = array<i64: 4, 8, 8>}, {transform_indices = @transform_2, window_bounds = array<i64: 4, 8, 8>}, {transform_indices = @transform_3, window_bounds = array<i64: 4, 8, 8>}, {pipeline_mode = #tpu.pipeline_mode<synchronous>, transform_indices = @transform_4, window_bounds = array<i64: 32, 32>}, {pipeline_mode = #tpu.pipeline_mode<synchronous>, transform_indices = @transform_5, window_bounds = array<i64: 1, 32>}, {transform_indices = @transform_6, window_bounds = array<i64: 8, 32>}]} {
    %c0_i32 = arith.constant 0 : i32
    %0 = arith.cmpi eq, %arg1, %c0_i32 : i32
    %1 = arith.extui %0 : i1 to i32
    %c0_i32_0 = arith.constant 0 : i32
    %2 = arith.cmpi ne, %1, %c0_i32_0 : i32
    scf.if %2 {
      %cst_37 = arith.constant 0xFF800000 : f32
      %46 = vector.broadcast %cst_37 : f32 to vector<4x8x1xf32>
      %c0_38 = arith.constant 0 : index
      %c0_39 = arith.constant 0 : index
      %c0_40 = arith.constant 0 : index
      %47 = vector.load %arg9[%c0_38, %c0_39, %c0_40] : memref<4x8x1xf32, #tpu.memory_space<vmem>>, vector<4x8x1xf32>
      tpu.vector_store %arg9[%c0_38, %c0_39, %c0_40], %46 {strides = array<i32>} : memref<4x8x1xf32, #tpu.memory_space<vmem>>, vector<4x8x1xf32>,
      %cst_41 = arith.constant 0.000000e+00 : f32
      %48 = vector.broadcast %cst_41 : f32 to vector<4x8x1xf32>
      %c0_42 = arith.constant 0 : index
      %c0_43 = arith.constant 0 : index
      %c0_44 = arith.constant 0 : index
      %49 = vector.load %arg10[%c0_42, %c0_43, %c0_44] : memref<4x8x1xf32, #tpu.memory_space<vmem>>, vector<4x8x1xf32>
      tpu.vector_store %arg10[%c0_42, %c0_43, %c0_44], %48 {strides = array<i32>} : memref<4x8x1xf32, #tpu.memory_space<vmem>>, vector<4x8x1xf32>,
      %cst_45 = arith.constant 0.000000e+00 : f32
      %50 = vector.broadcast %cst_45 : f32 to vector<4x8x8xf32>
      %c0_46 = arith.constant 0 : index
      %c0_47 = arith.constant 0 : index
      %c0_48 = arith.constant 0 : index
      %51 = vector.load %arg11[%c0_46, %c0_47, %c0_48] : memref<4x8x8xf32, #tpu.memory_space<vmem>>, vector<4x8x8xf32>
      tpu.vector_store %arg11[%c0_46, %c0_47, %c0_48], %50 {strides = array<i32>} : memref<4x8x8xf32, #tpu.memory_space<vmem>>, vector<4x8x8xf32>,
    } else {
    }
    %c0 = arith.constant 0 : index
    %c0_1 = arith.constant 0 : index
    %3 = vector.load %arg2[%c0, %c0_1] : memref<8x8xi8, #tpu.memory_space<vmem>>, vector<8x8xi8>
    %4 = arith.sitofp %3 : vector<8x8xi8> to vector<8x8xf32>
    %cst = arith.constant 0.000000e+00 : f32
    %5 = vector.broadcast %cst : f32 to vector<8x8xf32>
    %6 = arith.cmpf ogt, %4, %5 : vector<8x8xf32>
    %cst_2 = arith.constant 0.000000e+00 : f32
    %cst_3 = arith.constant -1.000000e+30 : f32
    %7 = vector.broadcast %cst_2 : f32 to vector<8x8xf32>
    %8 = vector.broadcast %cst_3 : f32 to vector<8x8xf32>
    %9 = arith.select %6, %7, %8 : vector<8x8xi1>, vector<8x8xf32>
    %c0_4 = arith.constant 0 : index
    %c0_5 = arith.constant 0 : index
    %c0_6 = arith.constant 0 : index
    %10 = vector.load %arg3[%c0_4, %c0_5, %c0_6] : memref<4x8x8xbf16, #tpu.memory_space<vmem>>, vector<4x8x8xbf16>
    %c0_7 = arith.constant 0 : index
    %c0_8 = arith.constant 0 : index
    %c0_9 = arith.constant 0 : index
    %11 = vector.load %arg4[%c0_7, %c0_8, %c0_9] : memref<4x8x8xbf16, #tpu.memory_space<vmem>>, vector<4x8x8xbf16>
    %cst_10 = arith.constant dense<0.000000e+00> : vector<4x8x8xf32>
    %12 = tpu.matmul %10, %11, %cst_10 {dimension_numbers = #tpu.dot_dimension_numbers<[2], [2], [1], [1], [0, 0, 0, 1, 1, 1], [0], [0]>} : vector<4x8x8xbf16>, vector<4x8x8xbf16>, vector<4x8x8xf32> -> vector<4x8x8xf32>
    %13 = vector.shape_cast %9 : vector<8x8xf32> to vector<1x8x8xf32>
    %14 = vector.broadcast %13 : vector<1x8x8xf32> to vector<4x8x8xf32>
    %15 = arith.addf %12, %14 : vector<4x8x8xf32>
    %c0_11 = arith.constant 0 : index
    %c0_12 = arith.constant 0 : index
    %c0_13 = arith.constant 0 : index
    %16 = vector.load %arg9[%c0_11, %c0_12, %c0_13] : memref<4x8x1xf32, #tpu.memory_space<vmem>>, vector<4x8x1xf32>
    %cst_14 = arith.constant dense<0xFF800000> : vector<4x8xf32>
    %17 = vector.multi_reduction <maximumf>, %15, %cst_14 [2] : vector<4x8x8xf32> to vector<4x8xf32>
    %18 = vector.shape_cast %17 : vector<4x8xf32> to vector<4x8x1xf32>
    %19 = arith.maximumf %16, %18 : vector<4x8x1xf32>
    %20 = arith.subf %16, %19 : vector<4x8x1xf32>
    %21 = math.exp %20 : vector<4x8x1xf32>
    %22 = vector.broadcast %19 : vector<4x8x1xf32> to vector<4x8x8xf32>
    %23 = arith.subf %15, %22 : vector<4x8x8xf32>
    %24 = math.exp %23 : vector<4x8x8xf32>
    %25 = vector.shape_cast %4 : vector<8x8xf32> to vector<1x8x8xf32>
    %26 = vector.broadcast %25 : vector<1x8x8xf32> to vector<4x8x8xf32>
    %27 = arith.mulf %24, %26 : vector<4x8x8xf32>
    %c0_15 = arith.constant 0 : index
    %c0_16 = arith.constant 0 : index
    %c0_17 = arith.constant 0 : index
    %28 = vector.load %arg10[%c0_15, %c0_16, %c0_17] : memref<4x8x1xf32, #tpu.memory_space<vmem>>, vector<4x8x1xf32>
    %29 = arith.mulf %21, %28 : vector<4x8x1xf32>
    %cst_18 = arith.constant dense<0.000000e+00> : vector<4x8xf32>
    %30 = vector.multi_reduction <add>, %27, %cst_18 [2] : vector<4x8x8xf32> to vector<4x8xf32>
    %31 = vector.shape_cast %30 : vector<4x8xf32> to vector<4x8x1xf32>
    %32 = arith.addf %29, %31 : vector<4x8x1xf32>
    %c0_19 = arith.constant 0 : index
    %c0_20 = arith.constant 0 : index
    %c0_21 = arith.constant 0 : index
    %33 = vector.load %arg10[%c0_19, %c0_20, %c0_21] : memref<4x8x1xf32, #tpu.memory_space<vmem>>, vector<4x8x1xf32>
    tpu.vector_store %arg10[%c0_19, %c0_20, %c0_21], %32 {strides = array<i32>} : memref<4x8x1xf32, #tpu.memory_space<vmem>>, vector<4x8x1xf32>,
    %34 = arith.truncf %27 : vector<4x8x8xf32> to vector<4x8x8xbf16>
    %c0_22 = arith.constant 0 : index
    %c0_23 = arith.constant 0 : index
    %c0_24 = arith.constant 0 : index
    %35 = vector.load %arg5[%c0_22, %c0_23, %c0_24] : memref<4x8x8xbf16, #tpu.memory_space<vmem>>, vector<4x8x8xbf16>
    %cst_25 = arith.constant dense<0.000000e+00> : vector<4x8x8xf32>
    %36 = tpu.matmul %34, %35, %cst_25 {dimension_numbers = #tpu.dot_dimension_numbers<[2], [1], [1], [2], [0, 0, 0, 1, 1, 2], [0], [0]>} : vector<4x8x8xbf16>, vector<4x8x8xbf16>, vector<4x8x8xf32> -> vector<4x8x8xf32>
    %c0_26 = arith.constant 0 : index
    %c0_27 = arith.constant 0 : index
    %c0_28 = arith.constant 0 : index
    %37 = vector.load %arg11[%c0_26, %c0_27, %c0_28] : memref<4x8x8xf32, #tpu.memory_space<vmem>>, vector<4x8x8xf32>
    %38 = vector.broadcast %21 : vector<4x8x1xf32> to vector<4x8x8xf32>
    %39 = arith.mulf %38, %37 : vector<4x8x8xf32>
    %40 = arith.addf %39, %36 : vector<4x8x8xf32>
    %c0_29 = arith.constant 0 : index
    %c0_30 = arith.constant 0 : index
    %c0_31 = arith.constant 0 : index
    %41 = vector.load %arg11[%c0_29, %c0_30, %c0_31] : memref<4x8x8xf32, #tpu.memory_space<vmem>>, vector<4x8x8xf32>
    tpu.vector_store %arg11[%c0_29, %c0_30, %c0_31], %40 {strides = array<i32>} : memref<4x8x8xf32, #tpu.memory_space<vmem>>, vector<4x8x8xf32>,
    %c0_32 = arith.constant 0 : index
    %c0_33 = arith.constant 0 : index
    %c0_34 = arith.constant 0 : index
    %42 = vector.load %arg9[%c0_32, %c0_33, %c0_34] : memref<4x8x1xf32, #tpu.memory_space<vmem>>, vector<4x8x1xf32>
    tpu.vector_store %arg9[%c0_32, %c0_33, %c0_34], %19 {strides = array<i32>} : memref<4x8x1xf32, #tpu.memory_space<vmem>>, vector<4x8x1xf32>,
    %c0_i32_35 = arith.constant 0 : i32
    %43 = arith.cmpi eq, %arg1, %c0_i32_35 : i32
    %44 = arith.extui %43 : i1 to i32
    %c0_i32_36 = arith.constant 0 : i32
    %45 = arith.cmpi ne, %44, %c0_i32_36 : i32
    scf.if %45 {
      %c0_37 = arith.constant 0 : index
      %c0_38 = arith.constant 0 : index
      %c0_39 = arith.constant 0 : index
      %46 = vector.load %arg10[%c0_37, %c0_38, %c0_39] : memref<4x8x1xf32, #tpu.memory_space<vmem>>, vector<4x8x1xf32>
      %cst_40 = arith.constant 0.000000e+00 : f32
      %47 = vector.broadcast %cst_40 : f32 to vector<4x8x1xf32>
      %48 = arith.cmpf ogt, %46, %47 : vector<4x8x1xf32>
      %cst_41 = arith.constant 1.000000e+00 : f32
      %49 = vector.broadcast %cst_41 : f32 to vector<4x8x1xf32>
      %50 = arith.select %48, %46, %49 : vector<4x8x1xi1>, vector<4x8x1xf32>
      %51 = tpu.reciprocal %50 {approx = true} : vector<4x8x1xf32> -> vector<4x8x1xf32>
      %52 = arith.mulf %50, %51 : vector<4x8x1xf32>
      %cst_42 = arith.constant 2.000000e+00 : f32
      %53 = vector.broadcast %cst_42 : f32 to vector<4x8x1xf32>
      %54 = arith.subf %53, %52 : vector<4x8x1xf32>
      %55 = arith.mulf %51, %54 : vector<4x8x1xf32>
      %c0_43 = arith.constant 0 : index
      %c0_44 = arith.constant 0 : index
      %c0_45 = arith.constant 0 : index
      %56 = vector.load %arg11[%c0_43, %c0_44, %c0_45] : memref<4x8x8xf32, #tpu.memory_space<vmem>>, vector<4x8x8xf32>
      %57 = vector.broadcast %55 : vector<4x8x1xf32> to vector<4x8x8xf32>
      %58 = arith.mulf %56, %57 : vector<4x8x8xf32>
      %59 = vector.extract_strided_slice %58 {offsets = [0, 0, 0], sizes = [1, 8, 8], strides = [1, 1, 1]} : vector<4x8x8xf32> to vector<1x8x8xf32>
      %60 = vector.shape_cast %59 : vector<1x8x8xf32> to vector<8x8xf32>
      %c0_46 = arith.constant 0 : index
      %c0_47 = arith.constant 0 : index
      %61 = vector.load %arg12[%c0_46, %c0_47] : memref<8x32xf32, #tpu.memory_space<vmem>>, vector<8x8xf32>
      tpu.vector_store %arg12[%c0_46, %c0_47], %60 {strides = array<i32>} : memref<8x32xf32, #tpu.memory_space<vmem>>, vector<8x8xf32>,
      %62 = vector.extract_strided_slice %58 {offsets = [1, 0, 0], sizes = [1, 8, 8], strides = [1, 1, 1]} : vector<4x8x8xf32> to vector<1x8x8xf32>
      %63 = vector.shape_cast %62 : vector<1x8x8xf32> to vector<8x8xf32>
      %c0_48 = arith.constant 0 : index
      %c8 = arith.constant 8 : index
      %64 = vector.load %arg12[%c0_48, %c8] : memref<8x32xf32, #tpu.memory_space<vmem>>, vector<8x8xf32>
      tpu.vector_store %arg12[%c0_48, %c8], %63 {strides = array<i32>} : memref<8x32xf32, #tpu.memory_space<vmem>>, vector<8x8xf32>,
      %65 = vector.extract_strided_slice %58 {offsets = [2, 0, 0], sizes = [1, 8, 8], strides = [1, 1, 1]} : vector<4x8x8xf32> to vector<1x8x8xf32>
      %66 = vector.shape_cast %65 : vector<1x8x8xf32> to vector<8x8xf32>
      %c0_49 = arith.constant 0 : index
      %c16 = arith.constant 16 : index
      %67 = vector.load %arg12[%c0_49, %c16] : memref<8x32xf32, #tpu.memory_space<vmem>>, vector<8x8xf32>
      tpu.vector_store %arg12[%c0_49, %c16], %66 {strides = array<i32>} : memref<8x32xf32, #tpu.memory_space<vmem>>, vector<8x8xf32>,
      %68 = vector.extract_strided_slice %58 {offsets = [3, 0, 0], sizes = [1, 8, 8], strides = [1, 1, 1]} : vector<4x8x8xf32> to vector<1x8x8xf32>
      %69 = vector.shape_cast %68 : vector<1x8x8xf32> to vector<8x8xf32>
      %c0_50 = arith.constant 0 : index
      %c24 = arith.constant 24 : index
      %70 = vector.load %arg12[%c0_50, %c24] : memref<8x32xf32, #tpu.memory_space<vmem>>, vector<8x8xf32>
      tpu.vector_store %arg12[%c0_50, %c24], %69 {strides = array<i32>} : memref<8x32xf32, #tpu.memory_space<vmem>>, vector<8x8xf32>,
      %c0_51 = arith.constant 0 : index
      %c0_52 = arith.constant 0 : index
      %71 = vector.load %arg12[%c0_51, %c0_52] : memref<8x32xf32, #tpu.memory_space<vmem>>, vector<8x32xf32>
      %72 = arith.truncf %71 : vector<8x32xf32> to vector<8x32xbf16>
      %c0_53 = arith.constant 0 : index
      %c0_54 = arith.constant 0 : index
      %73 = vector.load %arg6[%c0_53, %c0_54] : memref<32x32xbf16, #tpu.memory_space<vmem>>, vector<32x32xbf16>
      %cst_55 = arith.constant dense<0.000000e+00> : vector<8x32xf32>
      %74 = tpu.matmul %72, %73, %cst_55 {dimension_numbers = #tpu.dot_dimension_numbers<[1], [0], [0], [1], [0, 0, 1, 1], [], []>} : vector<8x32xbf16>, vector<32x32xbf16>, vector<8x32xf32> -> vector<8x32xf32>
      %c0_56 = arith.constant 0 : index
      %c0_57 = arith.constant 0 : index
      %75 = vector.load %arg7[%c0_56, %c0_57] : memref<1x32xf32, #tpu.memory_space<vmem>>, vector<1x32xf32>
      %76 = vector.broadcast %75 : vector<1x32xf32> to vector<8x32xf32>
      %77 = arith.addf %74, %76 : vector<8x32xf32>
      %c0_58 = arith.constant 0 : index
      %c0_59 = arith.constant 0 : index
      %78 = vector.load %arg8[%c0_58, %c0_59] : memref<8x32xf32, #tpu.memory_space<vmem>>, vector<8x32xf32>
      tpu.vector_store %arg8[%c0_58, %c0_59], %77 {strides = array<i32>} : memref<8x32xf32, #tpu.memory_space<vmem>>, vector<8x32xf32>,
    } else {
    }
    return
  }
  func.func @transform_0(%arg0: i32, %arg1: i32) -> (i32, i32) {
    %c0_i32 = arith.constant 0 : i32
    return %arg0, %arg1 : i32, i32
  }
  func.func @transform_1(%arg0: i32, %arg1: i32) -> (i32, i32, i32) {
    %c0_i32 = arith.constant 0 : i32
    %c0_i32_0 = arith.constant 0 : i32
    %c0_i32_1 = arith.constant 0 : i32
    return %c0_i32, %arg0, %c0_i32_0 : i32, i32, i32
  }
  func.func @transform_2(%arg0: i32, %arg1: i32) -> (i32, i32, i32) {
    %c0_i32 = arith.constant 0 : i32
    %c0_i32_0 = arith.constant 0 : i32
    %c0_i32_1 = arith.constant 0 : i32
    return %c0_i32, %arg1, %c0_i32_0 : i32, i32, i32
  }
  func.func @transform_3(%arg0: i32, %arg1: i32) -> (i32, i32, i32) {
    %c0_i32 = arith.constant 0 : i32
    %c0_i32_0 = arith.constant 0 : i32
    %c0_i32_1 = arith.constant 0 : i32
    return %c0_i32, %arg1, %c0_i32_0 : i32, i32, i32
  }
  func.func @transform_4(%arg0: i32, %arg1: i32) -> (i32, i32) {
    %c0_i32 = arith.constant 0 : i32
    %c0_i32_0 = arith.constant 0 : i32
    %c0_i32_1 = arith.constant 0 : i32
    return %c0_i32, %c0_i32_0 : i32, i32
  }
  func.func @transform_5(%arg0: i32, %arg1: i32) -> (i32, i32) {
    %c0_i32 = arith.constant 0 : i32
    %c0_i32_0 = arith.constant 0 : i32
    %c0_i32_1 = arith.constant 0 : i32
    return %c0_i32, %c0_i32_0 : i32, i32
  }
  func.func @transform_6(%arg0: i32, %arg1: i32) -> (i32, i32) {
    %c0_i32 = arith.constant 0 : i32
    %c0_i32_0 = arith.constant 0 : i32
    return %arg0, %c0_i32 : i32, i32
  }
}

</mosaic_0001>

<bundles_post_ra>
// kernel: tpu_custom_call.1
= control target key start
LH: loop header
LB: loop body
LE: loop exit
PB: predicated region body
PF: predicated region fallthrough
CT: control target
= control target key end

     0   :  { %11 = vsyncpa [#allocation7], 0  ;;  %s1359_s0 = inlined_call_operand.hbm [shape: s8[8,8], index: 0, kind: input, shape index: {}]   ;;  %s1360_s1 = inlined_call_operand.hbm [shape: bf16[4,8,8], index: 1, kind: input, shape index: {}]   ;;  %s1361_s2 = inlined_call_operand.hbm [shape: bf16[4,8,8], index: 2, kind: input, shape index: {}]   ;;  %s1362_s3 = inlined_call_operand.hbm [shape: bf16[4,8,8], index: 3, kind: input, shape index: {}]   ;;  %s1363_s4 = inlined_call_operand.hbm [shape: bf16[32,32], index: 4, kind: input, shape index: {}]   ;;  %s1364_s5 = inlined_call_operand.vmem [shape: f32[1,32], index: 5, kind: input, shape index: {}]   ;;  %s1365_s6 = inlined_call_operand.hbm [shape: f32[8,32], index: 6, kind: output, shape index: {}]  }
   0x1   :  { %12 = vsyncpa [#allocation10], 0 }
   0x2   :  { %13 = vsyncpa [#allocation13], 0 }
   0x3   :  { %14 = vsyncpa [#allocation8], 0  ;;  %s1073_s21 = smov [#allocation9]   ;;  %s933_s25 = scalar_lea.hbm %s1360_s1, 256 }
   0x4   :  { %s30_s22 = sshll.u32 %s1073_s21, 4  ;;  %p934_p0 = scmp.ne.s32.totalorder %s1360_s1, %s933_s25  ;;  %s31_s22 = int_to_ptr.vmem [resolvable:$true] %s30_s22 }
   0x5   :  { %p937_p1 = scmp.lt.u32.totalorder %s933_s25, %s1360_s1 }
   0x7   :  { %p939_p2 = pnand %p937_p1, %p934_p0 }
   0x9   :  { %942 = shalt.err (!%p939_p2)
}
   0xa   :  { %s943_s30 = scalar_lea.vmem %s31_s22, 256  ;;  %p948_p4 = scmp.lt.s32.totalorder %s31_s22, %s31_s22 }
   0xb   :  { %p944_p3 = scmp.ne.s32.totalorder %s31_s22, %s943_s30  ;;  %p949_p5 = scmp.lt.s32.totalorder %s943_s30, %s943_s30 }
   0xd   :  { %p950_p6 = por %p949_p5, %p948_p4 }
   0xf   :  { %p951_p7 = pnand %p950_p6, %p944_p3 }
  0x11   :  { %954 = shalt.err (!%p951_p7)
}
  0x12   :  { %s1074_s7 = smov 64   ;;  %s1075_s8 = smov 4  }
  0x13   :  { %36 = dma.hbm_to_vmem [thread:$0]  %s1360_s1, 256, %s31_s22, [#allocation10], %s1074_s7, %s1074_s7, %s1075_s8  }
  0x14   :  { %s1076_s11 = smov [#allocation12]   ;;  %s1077_s13 = smov [#allocation6]  }
  0x15   :  { %s54_s12 = sshll.u32 %s1076_s11, 4  ;;  %s21_s14 = sshll.u32 %s1077_s13, 4  ;;  %s55_s12 = int_to_ptr.vmem [resolvable:$true] %s54_s12  ;;  %s22_s14 = int_to_ptr.vmem [resolvable:$true] %s21_s14 }
  0x16   :  { %s955_s17 = scalar_lea.hbm %s1362_s3, 256 }
  0x17   :  { %p956_p8 = scmp.ne.s32.totalorder %s1362_s3, %s955_s17  ;;  %p959_p9 = scmp.lt.u32.totalorder %s955_s17, %s1362_s3 }
  0x19   :  { %p961_p10 = pnand %p959_p9, %p956_p8 }
  0x1b   :  { %964 = shalt.err (!%p961_p10)
}
  0x1c   :  { %s965_s1 = scalar_lea.vmem %s55_s12, 256  ;;  %p970_p12 = scmp.lt.s32.totalorder %s55_s12, %s55_s12 }
  0x1d   :  { %p966_p11 = scmp.ne.s32.totalorder %s55_s12, %s965_s1  ;;  %p971_p13 = scmp.lt.s32.totalorder %s965_s1, %s965_s1 }
  0x1f   :  { %p972_p0 = por %p971_p13, %p970_p12 }
  0x21   :  { %p973_p1 = pnand %p972_p0, %p966_p11 }
  0x23   :  { %976 = shalt.err (!%p973_p1)
}
  0x24   :  { %60 = dma.hbm_to_vmem [thread:$0]  %s1362_s3, 256, %s55_s12, [#allocation13], %s1074_s7, %s1074_s7, %s1075_s8  }
  0x25   :  { %s977_s26 = scalar_lea.hbm %s1359_s0, 32 }
  0x26   :  { %p978_p2 = scmp.ne.s32.totalorder %s1359_s0, %s977_s26  ;;  %p981_p3 = scmp.lt.u32.totalorder %s977_s26, %s1359_s0 }
  0x28   :  { %p983_p4 = pnand %p981_p3, %p978_p2 }
  0x2a   :  { %986 = shalt.err (!%p983_p4)
}
  0x2b   :  { %s987_s9 = scalar_lea.vmem %s22_s14, 32  ;;  %p992_p6 = scmp.lt.s32.totalorder %s22_s14, %s22_s14 }
  0x2c   :  { %p988_p5 = scmp.ne.s32.totalorder %s22_s14, %s987_s9  ;;  %p993_p7 = scmp.lt.s32.totalorder %s987_s9, %s987_s9 }
  0x2e   :  { %p994_p8 = por %p993_p7, %p992_p6 }
  0x30   :  { %p995_p9 = pnand %p994_p8, %p988_p5 }
  0x32   :  { %998 = shalt.err (!%p995_p9)
}
  0x33   :  { %24 = dma.hbm_to_vmem [thread:$0]  %s1359_s0, 32, %s22_s14, [#allocation7]  }
  0x34   :  { %s1078_s11 = smov [#allocation11]   ;;  %s1079_s13 = smov [#allocation14]  }
  0x35   :  { %s42_s12 = sshll.u32 %s1078_s11, 4  ;;  %s66_s15 = sshll.u32 %s1079_s13, 4  ;;  %s43_s12 = int_to_ptr.vmem [resolvable:$true] %s42_s12  ;;  %s67_s15 = int_to_ptr.vmem [resolvable:$true] %s66_s15 }
  0x36   :  { %s999_s18 = scalar_lea.hbm %s1361_s2, 256 }
  0x37   :  { %p1000_p10 = scmp.ne.s32.totalorder %s1361_s2, %s999_s18  ;;  %p1003_p11 = scmp.lt.u32.totalorder %s999_s18, %s1361_s2 }
  0x39   :  { %p1005_p12 = pnand %p1003_p11, %p1000_p10 }
  0x3b   :  { %1008 = shalt.err (!%p1005_p12)
}
  0x3c   :  { %s1009_s0 = scalar_lea.vmem %s43_s12, 256  ;;  %p1014_p0 = scmp.lt.s32.totalorder %s43_s12, %s43_s12 }
  0x3d   :  { %p1010_p13 = scmp.ne.s32.totalorder %s43_s12, %s1009_s0  ;;  %p1015_p1 = scmp.lt.s32.totalorder %s1009_s0, %s1009_s0 }
  0x3f   :  { %p1016_p2 = por %p1015_p1, %p1014_p0 }
  0x41   :  { %p1017_p3 = pnand %p1016_p2, %p1010_p13 }
  0x43   :  { %1020 = shalt.err (!%p1017_p3)
}
  0x44   :  { %48 = dma.hbm_to_vmem [thread:$0]  %s1361_s2, 256, %s43_s12, [#allocation10], %s1074_s7, %s1074_s7, %s1075_s8  }
  0x45   :  { %s1021_s25 = scalar_lea.hbm %s1363_s4, 256 }
  0x46   :  { %p1022_p4 = scmp.ne.s32.totalorder %s1363_s4, %s1021_s25  ;;  %p1025_p5 = scmp.lt.u32.totalorder %s1021_s25, %s1363_s4 }
  0x48   :  { %p1027_p6 = pnand %p1025_p5, %p1022_p4 }
  0x4a   :  { %1030 = shalt.err (!%p1027_p6)
}
  0x4b   :  { %s1031_s30 = scalar_lea.vmem %s67_s15, 256  ;;  %p1036_p8 = scmp.lt.s32.totalorder %s67_s15, %s67_s15 }
  0x4c   :  { %p1032_p7 = scmp.ne.s32.totalorder %s67_s15, %s1031_s30  ;;  %p1037_p9 = scmp.lt.s32.totalorder %s1031_s30, %s1031_s30 }
  0x4e   :  { %p1038_p10 = por %p1037_p9, %p1036_p8 }
  0x50   :  { %p1039_p11 = pnand %p1038_p10, %p1032_p7 }
  0x52   :  { %1042 = shalt.err (!%p1039_p11)
}
  0x53   :  { %72 = dma.hbm_to_vmem [thread:$0]  %s1363_s4, 256, %s67_s15, [#allocation13], %s1074_s7, %s1074_s7, %s1075_s8  }
  0x54   :  { %1065 = dma.done.wait [#allocation7], 32  }
  0x55   :  { %1066 = vsyncadd [#allocation7], 4294967264 }
  0x56   :  { %1067 = dma.done.wait [#allocation10], 512  }
  0x57   :  { %1068 = vsyncadd [#allocation10], 4294966784 }
  0x58   :  { %1069 = dma.done.wait [#allocation13], 512  }
  0x59   :  { %1070 = vsyncadd [#allocation13], 4294966784  ;;  %vm104_vm0 = vcmask 64512   ;;  %v1080_v0 = vmov 0.0   ;;  %vm1081_vm1 = vmmov 0   ;;  %vm95_vm2 = vcmask 7168  }
  0x5a   :  { %833 = vmatprep.subr.bf16.mxu0 %v1080_v0  ;;  %105 = vst.msk [vmem:[#allocation4] sm:$0xff] %vm104_vm0, %v1080_v0  ;;  %106 = vst.msk [vmem:[#allocation4 + $0x8] sm:$0xff] %vm104_vm0, %v1080_v0  ;;  %839 = vmatprep.subr.bf16.mxu1 %v1080_v0  ;;  %v118_v1 = vld [vmem:[#allocation11] sm:$0xf]  ;;  %v119_v2 = vld [vmem:[#allocation11 + $0x4] sm:$0xf] }
  0x5b   :  { %107 = vst.msk [vmem:[#allocation4 + $0x10] sm:$0xff] %vm104_vm0, %v1080_v0  ;;  %108 = vst.msk [vmem:[#allocation4 + $0x18] sm:$0xff] %vm104_vm0, %v1080_v0  ;;  %835 = vmatprep.mubr.msk.bf16.mxu0 %vm1081_vm1, %v1080_v0  ;;  %841 = vmatprep.mubr.msk.bf16.mxu1 %vm1081_vm1, %v1080_v0  ;;  %v127_v3 = vsel %vm104_vm0, %v118_v1, 0  ;;  %v173_v4 = vsel %vm104_vm0, %v119_v2, 0  ;;  %v120_v5 = vld [vmem:[#allocation11 + $0x8] sm:$0xf] }
  0x5c   :  { %834 = vmatpush3.bf16.xpose.msra.mxu0 %v127_v3  ;;  %840 = vmatpush3.bf16.xpose.msra.mxu1 %v173_v4  ;;  %v121_v6 = vld [vmem:[#allocation11 + $0xc] sm:$0xf]  ;;  %v114_v7 = vld [vmem:[#allocation9] sm:$0xf]  ;;  %v115_v8 = vld [vmem:[#allocation9 + $0x4] sm:$0xf] }
  0x5d   :  { %845 = vmatprep.subr.bf16.mxu0 %v1080_v0  ;;  %851 = vmatprep.subr.bf16.mxu1 %v1080_v0  ;;  %v219_v9 = vsel %vm104_vm0, %v120_v5, 0  ;;  %v265_v10 = vsel %vm104_vm0, %v121_v6, 0  ;;  %v116_v11 = vld [vmem:[#allocation9 + $0x8] sm:$0xf]  ;;  %v117_v12 = vld [vmem:[#allocation9 + $0xc] sm:$0xf] }
  0x5e   :  { %v1082_v13 = vmov -inf   ;;  %100 = vst.msk [vmem:[#allocation3] sm:$0xff] %vm95_vm2, %v1080_v0  ;;  %101 = vst.msk [vmem:[#allocation3 + $0x8] sm:$0xff] %vm95_vm2, %v1080_v0  ;;  %v109_v14 = vld [vmem:[#allocation6] sm:$0x3]  ;;  %v1084_v43 = vmov 0  }
  0x5f   :  { %96 = vst.msk [vmem:[#allocation2] sm:$0xff] %vm95_vm2, %v1082_v13  ;;  %97 = vst.msk [vmem:[#allocation2 + $0x8] sm:$0xff] %vm95_vm2, %v1082_v13  ;;  %v110_v15 = vunpack.c.0.s8 %v109_v14  ;;  %v1083_v17 = vmov -1e+30   ;;  %905 = vset.pattern.permute.xlu0 %v1084_v43  ;;  %906 = vset.pattern.permute.xlu1 %v1084_v43  ;;  %v408_v60 = vld [vmem:[#allocation12] sm:$0xf] }
  0x60   :  { %98 = vst.msk [vmem:[#allocation2 + $0x10] sm:$0xff] %vm95_vm2, %v1082_v13  ;;  %99 = vst.msk [vmem:[#allocation2 + $0x18] sm:$0xff] %vm95_vm2, %v1082_v13  ;;  %vm415_vm4 = vcmask 1043456   ;;  %v409_v62 = vld [vmem:[#allocation12 + $0x4] sm:$0xf]  ;;  %s1085_s4 = smov 8  }
  0x61   :  { %102 = vst.msk [vmem:[#allocation3 + $0x10] sm:$0xff] %vm95_vm2, %v1080_v0  ;;  %103 = vst.msk [vmem:[#allocation3 + $0x18] sm:$0xff] %vm95_vm2, %v1080_v0  ;;  %v1242_v16 = vcvt.s32.f32 %v110_v15  ;;  %v417_v61 = vsel %vm415_vm4, %v408_v60, 0  ;;  %v463_v63 = vsel %vm415_vm4, %v409_v62, 0  ;;  %v410_v14 = vld [vmem:[#allocation12 + $0x8] sm:$0xf] }
  0x62   :  { %s1086_s7 = smov 16   ;;  %s1087_s8 = smov 24   ;;  %vm701_vm9 = vcmask 130112   ;;  %vm707_vm10 = vcmask 195712   ;;  %vm713_vm11 = vcmask 261312   ;;  %vm740_vm12 = vcmask 261120  }
  0x63   :  { %836 = vmatmul.mubr.msk.bf16.vlgmr.msra.gmra.mrb[0].mxu0 %vm104_vm0, %v114_v7  ;;  %842 = vmatmul.mubr.msk.bf16.vlgmr.msra.gmra.mrb[0].mxu1 %vm104_vm0, %v115_v8  ;;  %vm112_vm3 = vcmp.gt.f32.partialorder %v1242_v16, 0.0  ;;  %s1088_s11 = smov [#allocation15]  }
  0x64   :  { %846 = vmatpush3.bf16.xpose.msra.mxu0 %v219_v9  ;;  %852 = vmatpush3.bf16.xpose.msra.mxu1 %v265_v10  ;;  %v113_v18 = vsel %vm112_vm3, 0.0, %v1083_v17  ;;  %s791_s12 = sshll.u32 %s1088_s11, 4  ;;  %s792_s12 = int_to_ptr.vmem [resolvable:$true] %s791_s12 }
  0x65   :  { %847 = vmatprep.mubr.msk.bf16.mxu0 %vm1081_vm1, %v1080_v0  ;;  %853 = vmatprep.mubr.msk.bf16.mxu1 %vm1081_vm1, %v1080_v0  ;;  %s1043_s13 = scalar_lea.vmem %s792_s12, 128  ;;  %p1048_p13 = scmp.lt.s32.totalorder %s792_s12, %s792_s12 }
  0x66   :  { %857 = vmatprep.subr.bf16.mxu0 %v1080_v0  ;;  %863 = vmatprep.subr.bf16.mxu1 %v1080_v0  ;;  %v1255_v44 = vld [vmem:[#allocation2] sm:$0xff]  ;;  %v1260_v47 = vld [vmem:[#allocation2 + $0x8] sm:$0xff]  ;;  %p1044_p12 = scmp.ne.s32.totalorder %s792_s12, %s1043_s13  ;;  %p1049_p0 = scmp.lt.s32.totalorder %s1043_s13, %s1043_s13 }
  0x67   :  { %v1270_v51 = vld [vmem:[#allocation2 + $0x10] sm:$0xff]  ;;  %v1280_v55 = vld [vmem:[#allocation2 + $0x18] sm:$0xff] }
  0x68   :  { %v377_v43 = vld [vmem:[#allocation3 + $0x10] sm:$0xff]  ;;  %p1050_p1 = por %p1049_p0, %p1048_p13 }
  0x6a   :  { %p1051_p2 = pnand %p1050_p1, %p1044_p12 }
  0x6b   :  { %848 = vmatmul.mubr.msk.bf16.vlgmr.msra.gmra.mrb[4].mxu0 %vm104_vm0, %v116_v11  ;;  %854 = vmatmul.mubr.msk.bf16.vlgmr.msra.gmra.mrb[4].mxu1 %vm104_vm0, %v117_v12 }
  0x6c   :  { %859 = vmatprep.mubr.msk.bf16.mxu0 %vm1081_vm1, %v1080_v0  ;;  %865 = vmatprep.mubr.msk.bf16.mxu1 %vm1081_vm1, %v1080_v0 }
  0x6d   :  { %858 = vmatpush3.bf16.msra.mxu0 %v417_v61  ;;  %864 = vmatpush3.bf16.msra.mxu1 %v463_v63 }
  0x6e   :  { %869 = vmatprep.subr.bf16.mxu0 %v1080_v0  ;;  %875 = vmatprep.subr.bf16.mxu1 %v1080_v0 }
 0x136   :  { %v163_v19 = vpop.f32.mrb[0].mxu0  ;;  %v209_v20 = vpop.f32.mrb[0].mxu1 }
 0x137   :  { %v1245_v21 = vadd.f32 %v163_v19, %v113_v18  ;;  %v837_v22 = vpop.f32.mrb[1].mxu0  ;;  %v1247_v23 = vadd.f32 %v209_v20, %v113_v18  ;;  %v843_v24 = vpop.f32.mrb[1].mxu1  ;;  %v411_v20 = vld [vmem:[#allocation12 + $0xc] sm:$0xf] }
 0x138   :  { %v166_v25 = vpop.f32.mrb[2].mxu0  ;;  %v212_v26 = vpop.f32.mrb[2].mxu1  ;;  %v555_v24 = vsel %vm415_vm4, %v411_v20, 0 }
 0x139   :  { %v838_v27 = vpop.f32.mrb[3].mxu0  ;;  %v311_v28 = vsel %vm104_vm0, %v1245_v21, -inf  ;;  %v844_v29 = vpop.f32.mrb[3].mxu1  ;;  %v314_v30 = vsel %vm104_vm0, %v1247_v23, -inf }
 0x13a   :  { %312 = vmax.xlane.f32.xlu0 %v311_v28 }
 0x13e   :  { %v255_v31 = vpop.f32.mrb[4].mxu0  ;;  %315 = vmax.xlane.f32.xlu0 %v314_v30  ;;  %v301_v32 = vpop.f32.mrb[4].mxu1 }
 0x13f   :  { %v256_v33 = vadd.f32 %v255_v31, %v113_v18  ;;  %v849_v34 = vpop.f32.mrb[5].mxu0  ;;  %v302_v35 = vadd.f32 %v301_v32, %v113_v18  ;;  %v855_v36 = vpop.f32.mrb[5].mxu1  ;;  %v509_v18 = vsel %vm415_vm4, %v410_v14, 0 }
 0x140   :  { %v258_v37 = vpop.f32.mrb[6].mxu0  ;;  %v304_v38 = vpop.f32.mrb[6].mxu1 }
 0x141   :  { %v850_v39 = vpop.f32.mrb[7].mxu0  ;;  %v317_v40 = vsel %vm104_vm0, %v256_v33, -inf  ;;  %v856_v41 = vpop.f32.mrb[7].mxu1  ;;  %v320_v42 = vsel %vm104_vm0, %v302_v35, -inf }
 0x142   :  { %318 = vmax.xlane.f32.xlu1 %v317_v40  ;;  %v376_v40 = vld [vmem:[#allocation3 + $0x8] sm:$0xff] }
 0x146   :  { %321 = vmax.xlane.f32.xlu1 %v320_v42 }
 0x1c7   :  { %v313_v45 = vpop.xlane.xlu0 %312 }
 0x1c8   :  { %v1258_v46 = vmax.f32 %v1255_v44, %v313_v45 }
 0x1ca   :  { %v327_v48 = vsub.f32 %v1255_v44, %v1258_v46  ;;  %633 = vst.msk [vmem:[#allocation2] sm:$0xff] %vm95_vm2, %v1258_v46  ;;  %341 = vperm.xlu0 %905, %v1258_v46  }
 0x1cb   :  { %v316_v49 = vpop.xlane.xlu0 %315 }
 0x1cc   :  { %v1268_v50 = vmax.f32 %v1260_v47, %v316_v49  ;;  %v331_v39 = vmul.f32 1.442695, %v327_v48 }
 0x1ce   :  { %v328_v52 = vsub.f32 %v1260_v47, %v1268_v50  ;;  %634 = vst.msk [vmem:[#allocation2 + $0x8] sm:$0xff] %vm95_vm2, %v1268_v50  ;;  %346 = vperm.xlu1 %906, %v1268_v50   ;;  %v378_v50 = vld [vmem:[#allocation3 + $0x18] sm:$0xff] }
 0x1cf   :  { %v319_v53 = vpop.xlane.xlu1 %318 }
 0x1d0   :  { %v1278_v54 = vmax.f32 %v1270_v51, %v319_v53 }
 0x1d2   :  { %v329_v56 = vsub.f32 %v1270_v51, %v1278_v54  ;;  %635 = vst.msk [vmem:[#allocation2 + $0x10] sm:$0xff] %vm95_vm2, %v1278_v54  ;;  %351 = vperm.xlu1 %906, %v1278_v54  }
 0x1d3   :  { %v322_v57 = vpop.xlane.xlu1 %321 }
 0x1d4   :  { %v1288_v58 = vmax.f32 %v1280_v55, %v322_v57 }
 0x1d6   :  { %v330_v59 = vsub.f32 %v1280_v55, %v1288_v58  ;;  %636 = vst.msk [vmem:[#allocation2 + $0x18] sm:$0xff] %vm95_vm2, %v1288_v58  ;;  %356 = vperm.xlu1 %906, %v1288_v58   ;;  %v375_v55 = vld [vmem:[#allocation3] sm:$0xff] }
 0x249   :  { %v342_v1 = vpop.permute.xlu0 %341 }
 0x24a   :  { %v359_v2 = vsub.f32 %v1245_v21, %v342_v1 }
 0x24c   :  { %v363_v3 = vmul.f32 1.442695, %v359_v2 }
 0x24d   :  { %v347_v4 = vpop.permute.xlu1 %346 }
 0x24e   :  { %909 = vpow2.f32 %v363_v3  ;;  %v360_v5 = vsub.f32 %v1247_v23, %v347_v4 }
 0x250   :  { %v365_v6 = vmul.f32 1.442695, %v360_v5 }
 0x251   :  { %v352_v7 = vpop.permute.xlu1 %351 }
 0x252   :  { %911 = vpow2.f32 %v365_v6  ;;  %v361_v8 = vsub.f32 %v256_v33, %v352_v7  ;;  %v335_v33 = vmul.f32 1.442695, %v329_v56 }
 0x254   :  { %v367_v9 = vmul.f32 1.442695, %v361_v8 }
 0x255   :  { %v357_v10 = vpop.permute.xlu1 %356 }
 0x256   :  { %913 = vpow2.f32 %v367_v9  ;;  %v362_v11 = vsub.f32 %v302_v35, %v357_v10  ;;  %v337_v35 = vmul.f32 1.442695, %v330_v59 }
 0x258   :  { %v910_v12 = vpop.eup %909  ;;  %v369_v13 = vmul.f32 1.442695, %v362_v11 }
 0x259   :  { %v371_v15 = vmul.f32 %v910_v12, %v1242_v16 }
 0x25a   :  { %915 = vpow2.f32 %v369_v13 }
 0x25b   :  { %v404_v17 = vpack.c.bf16 %v371_v15, %v371_v15  ;;  %v383_v34 = vsel %vm104_vm0, %v371_v15, 0.0  ;;  %917 = vpow2.f32 %v335_v33 }
 0x25c   :  { %v912_v19 = vpop.eup %911 }
 0x25d   :  { %860 = vmatmul.mubr.msk.bf16.vlgmr.msra.gmra.mrb[8].mxu0 %vm104_vm0, %v404_v17  ;;  %v372_v21 = vmul.f32 %v912_v19, %v1242_v16  ;;  %v598_v19 = vld [vmem:[#allocation4 + $0x8] sm:$0xff] }
 0x25e   :  { %870 = vmatpush3.bf16.msra.mxu0 %v509_v18  ;;  %871 = vmatprep.mubr.msk.bf16.mxu0 %vm1081_vm1, %v1080_v0 }
 0x25f   :  { %v386_v22 = vsel %vm104_vm0, %v372_v21, 0.0  ;;  %v405_v23 = vpack.c.bf16 %v372_v21, %v372_v21  ;;  %881 = vmatprep.subr.bf16.mxu0 %v1080_v0 }
 0x260   :  { %v914_v25 = vpop.eup %913  ;;  %387 = vadd.xlane.f32.xlu1 %v386_v22 }
 0x261   :  { %866 = vmatmul.mubr.msk.bf16.vlgmr.msra.gmra.mrb[8].mxu1 %vm104_vm0, %v405_v23  ;;  %v373_v26 = vmul.f32 %v914_v25, %v1242_v16 }
 0x262   :  { %876 = vmatpush3.bf16.msra.mxu1 %v555_v24  ;;  %877 = vmatprep.mubr.msk.bf16.mxu1 %vm1081_vm1, %v1080_v0 }
 0x263   :  { %v389_v27 = vsel %vm104_vm0, %v373_v26, 0.0  ;;  %v406_v28 = vpack.c.bf16 %v373_v26, %v373_v26  ;;  %v599_v26 = vld [vmem:[#allocation4 + $0x10] sm:$0xff] }
 0x264   :  { %v916_v29 = vpop.eup %915  ;;  %390 = vadd.xlane.f32.xlu0 %v389_v27 }
 0x265   :  { %872 = vmatmul.mubr.msk.bf16.vlgmr.msra.gmra.mrb[12].mxu0 %vm104_vm0, %v406_v28  ;;  %v374_v30 = vmul.f32 %v916_v29, %v1242_v16  ;;  %v333_v16 = vmul.f32 1.442695, %v328_v52  ;;  %v918_v36 = vpop.eup %917 }
 0x266   :  { %885 = vmatprep.mubr.msk.bf16.mxu0 %vm1081_vm1, %v1080_v0  ;;  %v381_v47 = vmul.f32 %v918_v36, %v377_v43 }
 0x267   :  { %v392_v31 = vsel %vm104_vm0, %v374_v30, 0.0  ;;  %v407_v32 = vpack.c.bf16 %v374_v30, %v374_v30  ;;  %919 = vpow2.f32 %v333_v16 }
 0x268   :  { %393 = vadd.xlane.f32.xlu1 %v392_v31  ;;  %921 = vpow2.f32 %v337_v35 }
 0x269   :  { %878 = vmatmul.mubr.msk.bf16.vlgmr.msra.gmra.mrb[12].mxu1 %vm104_vm0, %v407_v32  ;;  %923 = vpow2.f32 %v331_v39 }
 0x26c   :  { %384 = vadd.xlane.f32.xlu1 %v383_v34  ;;  %v600_v34 = vld [vmem:[#allocation4 + $0x18] sm:$0xff] }
 0x271   :  { %v920_v37 = vpop.eup %919 }
 0x272   :  { %v922_v38 = vpop.eup %921  ;;  %v380_v41 = vmul.f32 %v920_v37, %v376_v40 }
 0x273   :  { %v382_v52 = vmul.f32 %v922_v38, %v378_v50  ;;  %v924_v53 = vpop.eup %923 }
 0x274   :  { %v379_v48 = vmul.f32 %v924_v53, %v375_v55 }
 0x27a   :  { %613 = vperm.xlu0 %905, %v918_v36  }
 0x27d   :  { %608 = vperm.xlu1 %906, %v920_v37  }
 0x281   :  { %618 = vperm.xlu1 %906, %v922_v38  }
 0x2ed   :  { %v388_v42 = vpop.xlane.xlu1 %387 }
 0x2ee   :  { %v396_v45 = vadd.f32 %v388_v42, %v380_v41 }
 0x2f0   :  { %401 = vst.msk [vmem:[#allocation3 + $0x8] sm:$0xff] %vm95_vm2, %v396_v45 }
 0x2f1   :  { %v391_v49 = vpop.xlane.xlu0 %390 }
 0x2f2   :  { %v397_v51 = vadd.f32 %v391_v49, %v381_v47  ;;  %v907_v49 = vld [vmem:[#allocation14] sm:$0xff]  }
 0x2f3   :  { %882 = vmatpush3.bf16.msra.mxu0 %v907_v49 }
 0x2f4   :  { %402 = vst.msk [vmem:[#allocation3 + $0x10] sm:$0xff] %vm95_vm2, %v397_v51  ;;  %883 = vmatprep.subr.bf16.mxu0 %v1080_v0 }
 0x2f5   :  { %v394_v54 = vpop.xlane.xlu1 %393 }
 0x2f6   :  { %v398_v44 = vadd.f32 %v394_v54, %v382_v52  ;;  %v908_v52 = vld [vmem:[#allocation14 + $0x8] sm:$0xff]  }
 0x2f7   :  { %v641_v46 = vld [vmem:[#allocation3 + $0x8] sm:$0xff]  ;;  %884 = vmatpush3.bf16.msra.mxu0 %v908_v52 }
 0x2f8   :  { %403 = vst.msk [vmem:[#allocation3 + $0x18] sm:$0xff] %vm95_vm2, %v398_v44  ;;  %vm645_vm5 = vcmp.gt.f32.partialorder %v641_v46, 0.0 }
 0x2f9   :  { %v385_v56 = vpop.xlane.xlu1 %384  ;;  %v649_v57 = vsel %vm645_vm5, %v641_v46, 1.0  ;;  %v614_v27 = vpop.permute.xlu0 %613  ;;  %v597_v46 = vld [vmem:[#allocation4] sm:$0xff] }
 0x2fa   :  { %v395_v58 = vadd.f32 %v385_v56, %v379_v48  ;;  %925 = vrcp.f32 %v649_v57  ;;  %v623_v32 = vmul.f32 %v614_v27, %v599_v26 }
 0x2fb   :  { %v642_v59 = vld [vmem:[#allocation3 + $0x10] sm:$0xff] }
 0x2fc   :  { %400 = vst.msk [vmem:[#allocation3] sm:$0xff] %vm95_vm2, %v395_v58  ;;  %vm646_vm6 = vcmp.gt.f32.partialorder %v642_v59, 0.0 }
 0x2fd   :  { %v650_v60 = vsel %vm646_vm6, %v642_v59, 1.0  ;;  %v609_v20 = vpop.permute.xlu1 %608 }
 0x2fe   :  { %927 = vrcp.f32 %v650_v60  ;;  %v622_v24 = vmul.f32 %v609_v20, %v598_v19 }
 0x2ff   :  { %v643_v61 = vld [vmem:[#allocation3 + $0x18] sm:$0xff] }
 0x300   :  { %vm647_vm7 = vcmp.gt.f32.partialorder %v643_v61, 0.0 }
 0x301   :  { %v651_v62 = vsel %vm647_vm7, %v643_v61, 1.0  ;;  %v619_v16 = vpop.permute.xlu1 %618 }
 0x302   :  { %929 = vrcp.f32 %v651_v62  ;;  %v624_v39 = vmul.f32 %v619_v16, %v600_v34 }
 0x303   :  { %v640_v63 = vld [vmem:[#allocation3] sm:$0xff] }
 0x304   :  { %v926_v1 = vpop.eup %925  ;;  %vm644_vm8 = vcmp.gt.f32.partialorder %v640_v63, 0.0 }
 0x305   :  { %v657_v2 = vmul.f32 %v926_v1, %v649_v57  ;;  %v648_v3 = vsel %vm644_vm8, %v640_v63, 1.0 }
 0x306   :  { %931 = vrcp.f32 %v648_v3 }
 0x307   :  { %v661_v4 = vsub.f32 2.0, %v657_v2 }
 0x308   :  { %v928_v5 = vpop.eup %927 }
 0x309   :  { %v665_v6 = vmul.f32 %v926_v1, %v661_v4  ;;  %v658_v7 = vmul.f32 %v928_v5, %v650_v60 }
 0x30b   :  { %679 = vperm.xlu1 %906, %v665_v6   ;;  %v662_v8 = vsub.f32 2.0, %v658_v7 }
 0x30c   :  { %v930_v9 = vpop.eup %929 }
 0x30d   :  { %v666_v10 = vmul.f32 %v928_v5, %v662_v8  ;;  %v659_v11 = vmul.f32 %v930_v9, %v651_v62  ;;  %v810_v5 = vld [vmem:[%s1364_s5] ss:$0 sm:$0xff] }
 0x30f   :  { %684 = vperm.xlu1 %906, %v666_v10   ;;  %v663_v12 = vsub.f32 2.0, %v659_v11 }
 0x310   :  { %v932_v13 = vpop.eup %931 }
 0x311   :  { %v667_v14 = vmul.f32 %v930_v9, %v663_v12  ;;  %v656_v15 = vmul.f32 %v932_v13, %v648_v3 }
 0x313   :  { %689 = vperm.xlu0 %905, %v667_v14   ;;  %603 = vperm.xlu1 %906, %v924_v53   ;;  %v660_v17 = vsub.f32 2.0, %v656_v15 }
 0x315   :  { %v664_v18 = vmul.f32 %v932_v13, %v660_v17 }
 0x317   :  { %674 = vperm.xlu0 %905, %v664_v18  }
 0x330   :  { %v453_v21 = vpop.f32.mrb[8].mxu0 }
 0x331   :  { %v861_v22 = vpop.f32.mrb[9].mxu0 }
 0x332   :  { %v456_v23 = vpop.f32.mrb[10].mxu0 }
 0x333   :  { %v862_v25 = vpop.f32.mrb[11].mxu0 }
 0x334   :  { %v499_v28 = vpop.f32.mrb[8].mxu1 }
 0x335   :  { %v626_v29 = vadd.f32 %v622_v24, %v499_v28  ;;  %v867_v30 = vpop.f32.mrb[9].mxu1 }
 0x336   :  { %v502_v31 = vpop.f32.mrb[10].mxu1 }
 0x337   :  { %630 = vst.msk [vmem:[#allocation4 + $0x8] sm:$0xff] %vm104_vm0, %v626_v29  ;;  %v868_v33 = vpop.f32.mrb[11].mxu1 }
 0x338   :  { %v545_v35 = vpop.f32.mrb[12].mxu0 }
 0x339   :  { %v627_v36 = vadd.f32 %v623_v32, %v545_v35  ;;  %v873_v37 = vpop.f32.mrb[13].mxu0 }
 0x33a   :  { %v548_v38 = vpop.f32.mrb[14].mxu0 }
 0x33b   :  { %631 = vst.msk [vmem:[#allocation4 + $0x10] sm:$0xff] %vm104_vm0, %v627_v36  ;;  %v874_v40 = vpop.f32.mrb[15].mxu0 }
 0x33c   :  { %v591_v41 = vpop.f32.mrb[12].mxu1 }
 0x33d   :  { %v628_v42 = vadd.f32 %v624_v39, %v591_v41  ;;  %v879_v43 = vpop.f32.mrb[13].mxu1 }
 0x33e   :  { %v594_v45 = vpop.f32.mrb[14].mxu1  ;;  %v669_v50 = vld [vmem:[#allocation4 + $0x8] sm:$0xff] }
 0x33f   :  { %632 = vst.msk [vmem:[#allocation4 + $0x18] sm:$0xff] %vm104_vm0, %v628_v42  ;;  %v880_v47 = vpop.f32.mrb[15].mxu1 }
 0x342   :  { %v670_v55 = vld [vmem:[#allocation4 + $0x10] sm:$0xff] }
 0x346   :  { %v671_v48 = vld [vmem:[#allocation4 + $0x18] sm:$0xff] }
 0x38a   :  { %v680_v51 = vpop.permute.xlu1 %679 }
 0x38b   :  { %v693_v53 = vmul.f32 %v680_v51, %v669_v50 }
 0x38d   :  { %698 = vrot.lane.b32.xlu1 %v693_v53, %s1085_s4 }
 0x38e   :  { %v685_v54 = vpop.permute.xlu1 %684 }
 0x38f   :  { %v694_v44 = vmul.f32 %v685_v54, %v670_v55 }
 0x391   :  { %704 = vrot.lane.b32.xlu0 %v694_v44, %s1086_s7 }
 0x392   :  { %v690_v56 = vpop.permute.xlu0 %689  ;;  %v604_v57 = vpop.permute.xlu1 %603 }
 0x393   :  { %v695_v58 = vmul.f32 %v690_v56, %v671_v48  ;;  %v621_v59 = vmul.f32 %v604_v57, %v597_v46 }
 0x395   :  { %v625_v60 = vadd.f32 %v621_v59, %v453_v21  ;;  %710 = vrot.lane.b32.xlu1 %v695_v58, %s1087_s8 }
 0x396   :  { %v675_v61 = vpop.permute.xlu0 %674 }
 0x397   :  { %629 = vst.msk [vmem:[#allocation4] sm:$0xff] %vm104_vm0, %v625_v60 }
 0x39e   :  { %v668_v0 = vld [vmem:[#allocation4] sm:$0xff] }
 0x39f   :  { %v692_v62 = vmul.f32 %v675_v61, %v668_v0 }
 0x3a1   :  { %696 = vst.msk [vmem:[#allocation5] sm:$0xff] %vm104_vm0, %v692_v62 }
 0x3ff   :  { %v699_v63 = vpop.permute.xlu1 %698 }
 0x400   :  { %702 = vst.msk [vmem:[#allocation5] sm:$0xff] %vm701_vm9, %v699_v63 }
 0x403   :  { %v705_v1 = vpop.permute.xlu0 %704 }
 0x404   :  { %708 = vst.msk [vmem:[#allocation5] sm:$0xff] %vm707_vm10, %v705_v1 }
 0x407   :  { %v711_v2 = vpop.permute.xlu1 %710 }
 0x408   :  { %714 = vst.msk [vmem:[#allocation5] sm:$0xff] %vm713_vm11, %v711_v2 }
 0x40f   :  { %v715_v3 = vld [vmem:[#allocation5] sm:$0xff] }
 0x410   :  { %v716_v4 = vpack.c.bf16 %v715_v3, %v715_v3 }
 0x412   :  { %886 = vmatmul.mubr.msk.bf16.vlgmr.msra.gmra.mrb[16].mxu0 %vm740_vm12, %v716_v4 }
 0x4e5   :  { %v778_v6 = vpop.f32.mrb[16].mxu0 }
 0x4e6   :  { %v779_v7 = vadd.f32 %v810_v5, %v778_v6  ;;  %v887_v8 = vpop.f32.mrb[17].mxu0 }
 0x4e7   :  { %v781_v9 = vpop.f32.mrb[18].mxu0 }
 0x4e8   :  { %784 = vst.msk [vmem:[#allocation15] sm:$0xff] %vm740_vm12, %v779_v7  ;;  %v888_v10 = vpop.f32.mrb[19].mxu0 }
 0x4e9   :  { %1054 = shalt.err (!%p1051_p2)
}
 0x4ea   :  { %s1055_s5 = scalar_lea.hbm %s1365_s6, 128 }
 0x4eb   :  { %p1056_p3 = scmp.ne.s32.totalorder %s1365_s6, %s1055_s5  ;;  %p1059_p4 = scmp.lt.u32.totalorder %s1055_s5, %s1365_s6 }
 0x4ed   :  { %p1061_p5 = pnand %p1059_p4, %p1056_p3 }
 0x4ef   :  { %1064 = shalt.err (!%p1061_p5)
}
 0x4f0   :  { %794 = dma.vmem_to_hbm [thread:$0]  %s792_s12, 128, %s1365_s6, [#allocation8]  }
 0x4f1   :  { %1071 = dma.done.wait [#allocation8], 128  }
 0x4f2   :  { %1072 = vsyncadd [#allocation8], 4294967168 }
 0x4f3   :  { %798 = vsyncpa [#allocation7], 1 }
 0x4f4   :  { %799 = vsyncpa [#allocation10], 1 }
 0x4f5   :  { %800 = vsyncpa [#allocation13], 1 }
 0x4f6   :  { %801 = vsyncpa [#allocation8], 1 }

</bundles_post_ra>
